<compile_context>
chip_gen: v7x
topology: tpu7x:2x2x1
jax: 0.10.0
libtpu: 0.0.40
codegen_flags: <defaults>
</compile_context>

<pallas_src>
import jax
import jax.numpy as jnp
from jax.experimental import pallas as pl
from jax.experimental.pallas import tpu as pltpu


def permute_linear_kernel(x_ref, wb_ref, o_ref):
    # x_ref:  (1, d_in, S)            f32 VMEM  -- one batch row, pre-permute layout
    # wb_ref: (d_out*d_in + d_out,)   f32 SMEM  -- [W row-major | bias]
    # o_ref:  (1, d_out, S)           f32 VMEM  -- transposed output layout
    #
    #   o[0, k, s] = sum_j x[0, j, s] * W[k, j] + b[k]
    #   (== x.permute(0, 2, 1) @ W.T + b, stored transposed)
    x = x_ref[...]
    _, d_in, S = x.shape
    d_out = o_ref.shape[1]

    for k in range(d_out):                                   # unrolled (d_out == 2)
        # Bias as accumulator initializer (SMEM scalar -> lane broadcast).
        row = jnp.full((1, S), wb_ref[d_out * d_in + k], jnp.float32)
        for j in range(d_in):                                # unrolled (d_in == 2)
            row = row + x[:, j, :] * wb_ref[k * d_in + j]    # VPU scalar-bcast FMA
        o_ref[:, k, :] = row                                 # store one sublane row


def model_forward(x, w, b):
    B, d_in, S = x.shape
    d_out = w.shape[0]

    # Pack weight (row-major) and bias into one flat scalar slab for SMEM:
    # one tiny scalar transfer instead of a padded (8,128) VMEM weight tile.
    wb = jnp.concatenate([w.reshape(-1), b.reshape(-1)]).astype(jnp.float32)

    out_t = pl.pallas_call(
        permute_linear_kernel,
        out_shape=jax.ShapeDtypeStruct((B, d_out, S), jnp.float32),
        grid=(B,),
        in_specs=[
            pl.BlockSpec((1, d_in, S), lambda b_: (b_, 0, 0)),
            pl.BlockSpec(memory_space=pltpu.MemorySpace.SMEM),
        ],
        out_specs=pl.BlockSpec((1, d_out, S), lambda b_: (b_, 0, 0)),
        compiler_params=pltpu.CompilerParams(
            dimension_semantics=("parallel",)),
    )(x, wb)

    # Final layout permute (B, d_out, S) -> (B, S, d_out) done in the wrapper
    # (layout plumbing, not compute; kernel stays row-store friendly).
    return jnp.transpose(out_t, (0, 2, 1))


if __name__ == "__main__":
    key = jax.random.PRNGKey(0)
    kx, kw, kb = jax.random.split(key, 3)

    # Input matching torch.randn(1, 2, 2)
    x = jax.random.normal(kx, (1, 2, 2), dtype=jnp.float32)

    # nn.Linear(2, 2) parameters, deterministic init (uniform(-1/sqrt(2), 1/sqrt(2)))
    bound = 1.0 / jnp.sqrt(2.0)
    w = jax.random.uniform(kw, (2, 2), dtype=jnp.float32, minval=-bound, maxval=bound)
    b = jax.random.uniform(kb, (2,), dtype=jnp.float32, minval=-bound, maxval=bound)

    out = model_forward(x, w, b)
    jax.block_until_ready(out)

    # Reference: out[b, i, k] = sum_j x[b, j, i] * w[k, j] + b[k]  (dropout p=0 == id)
    ref = jnp.einsum("bji,kj->bik", x, w) + b[None, None, :]
    assert out.shape == (1, 2, 2)
    assert jnp.allclose(out, ref, atol=1e-5, rtol=1e-5)

    print("KERNEL_OK")
</pallas_src>

<mosaic_0001>
module attributes {stable_mosaic.version = 11 : i64} {
  func.func @permute_linear_kernel(%arg0: i32, %arg1: memref<1x2x2xf32, #tpu.memory_space<vmem>>, %arg2: memref<6xf32, #tpu.memory_space<smem>>, %arg3: memref<1x2x2xf32, #tpu.memory_space<vmem>>) attributes {dimension_semantics = [#tpu.dimension_semantics<parallel>], iteration_bounds = array<i64: 1>, scalar_prefetch = 0 : i64, scratch_operands = 0 : i64, tpu.core_type = #tpu.core_type<tc>, window_params = [{transform_indices = @transform_0, window_bounds = array<i64: 1, 2, 2>}, {transform_indices = @transform_1, window_bounds = array<i64: 6>}, {transform_indices = @transform_2, window_bounds = array<i64: 1, 2, 2>}]} {
    %c0 = arith.constant 0 : index
    %c0_0 = arith.constant 0 : index
    %c0_1 = arith.constant 0 : index
    %0 = vector.load %arg1[%c0, %c0_0, %c0_1] : memref<1x2x2xf32, #tpu.memory_space<vmem>>, vector<1x2x2xf32>
    %c4 = arith.constant 4 : index
    %1 = memref.load %arg2[%c4] : memref<6xf32, #tpu.memory_space<smem>>
    %2 = vector.broadcast %1 : f32 to vector<1x2xf32>
    %3 = vector.extract_strided_slice %0 {offsets = [0, 0, 0], sizes = [1, 1, 2], strides = [1, 1, 1]} : vector<1x2x2xf32> to vector<1x1x2xf32>
    %4 = vector.shape_cast %3 : vector<1x1x2xf32> to vector<1x2xf32>
    %c0_2 = arith.constant 0 : index
    %5 = memref.load %arg2[%c0_2] : memref<6xf32, #tpu.memory_space<smem>>
    %6 = vector.broadcast %5 : f32 to vector<1x2xf32>
    %7 = arith.mulf %4, %6 : vector<1x2xf32>
    %8 = arith.addf %2, %7 : vector<1x2xf32>
    %9 = vector.extract_strided_slice %0 {offsets = [0, 1, 0], sizes = [1, 1, 2], strides = [1, 1, 1]} : vector<1x2x2xf32> to vector<1x1x2xf32>
    %10 = vector.shape_cast %9 : vector<1x1x2xf32> to vector<1x2xf32>
    %c1 = arith.constant 1 : index
    %11 = memref.load %arg2[%c1] : memref<6xf32, #tpu.memory_space<smem>>
    %12 = vector.broadcast %11 : f32 to vector<1x2xf32>
    %13 = arith.mulf %10, %12 : vector<1x2xf32>
    %14 = arith.addf %8, %13 : vector<1x2xf32>
    %c0_3 = arith.constant 0 : index
    %c0_4 = arith.constant 0 : index
    %c0_5 = arith.constant 0 : index
    %15 = vector.load %arg3[%c0_3, %c0_4, %c0_5] : memref<1x2x2xf32, #tpu.memory_space<vmem>>, vector<1x1x2xf32>
    %16 = vector.shape_cast %15 : vector<1x1x2xf32> to vector<1x2xf32>
    %17 = vector.shape_cast %14 : vector<1x2xf32> to vector<1x1x2xf32>
    tpu.vector_store %arg3[%c0_3, %c0_4, %c0_5], %17 {strides = array<i32>} : memref<1x2x2xf32, #tpu.memory_space<vmem>>, vector<1x1x2xf32>,
    %c5 = arith.constant 5 : index
    %18 = memref.load %arg2[%c5] : memref<6xf32, #tpu.memory_space<smem>>
    %19 = vector.broadcast %18 : f32 to vector<1x2xf32>
    %20 = vector.extract_strided_slice %0 {offsets = [0, 0, 0], sizes = [1, 1, 2], strides = [1, 1, 1]} : vector<1x2x2xf32> to vector<1x1x2xf32>
    %21 = vector.shape_cast %20 : vector<1x1x2xf32> to vector<1x2xf32>
    %c2 = arith.constant 2 : index
    %22 = memref.load %arg2[%c2] : memref<6xf32, #tpu.memory_space<smem>>
    %23 = vector.broadcast %22 : f32 to vector<1x2xf32>
    %24 = arith.mulf %21, %23 : vector<1x2xf32>
    %25 = arith.addf %19, %24 : vector<1x2xf32>
    %26 = vector.extract_strided_slice %0 {offsets = [0, 1, 0], sizes = [1, 1, 2], strides = [1, 1, 1]} : vector<1x2x2xf32> to vector<1x1x2xf32>
    %27 = vector.shape_cast %26 : vector<1x1x2xf32> to vector<1x2xf32>
    %c3 = arith.constant 3 : index
    %28 = memref.load %arg2[%c3] : memref<6xf32, #tpu.memory_space<smem>>
    %29 = vector.broadcast %28 : f32 to vector<1x2xf32>
    %30 = arith.mulf %27, %29 : vector<1x2xf32>
    %31 = arith.addf %25, %30 : vector<1x2xf32>
    %c0_6 = arith.constant 0 : index
    %c1_7 = arith.constant 1 : index
    %c0_8 = arith.constant 0 : index
    %32 = vector.load %arg3[%c0_6, %c1_7, %c0_8] : memref<1x2x2xf32, #tpu.memory_space<vmem>>, vector<1x1x2xf32>
    %33 = vector.shape_cast %32 : vector<1x1x2xf32> to vector<1x2xf32>
    %34 = vector.shape_cast %31 : vector<1x2xf32> to vector<1x1x2xf32>
    tpu.vector_store %arg3[%c0_6, %c1_7, %c0_8], %34 {strides = array<i32>} : memref<1x2x2xf32, #tpu.memory_space<vmem>>, vector<1x1x2xf32>,
    return
  }
  func.func @transform_0(%arg0: i32) -> (i32, i32, i32) {
    %c0_i32 = arith.constant 0 : i32
    %c0_i32_0 = arith.constant 0 : i32
    %c0_i32_1 = arith.constant 0 : i32
    return %arg0, %c0_i32, %c0_i32_0 : i32, i32, i32
  }
  func.func @transform_1(%arg0: i32) -> i32 {
    %c0_i32 = arith.constant 0 : i32
    %c0_i32_0 = arith.constant 0 : i32
    return %c0_i32 : i32
  }
  func.func @transform_2(%arg0: i32) -> (i32, i32, i32) {
    %c0_i32 = arith.constant 0 : i32
    %c0_i32_0 = arith.constant 0 : i32
    %c0_i32_1 = arith.constant 0 : i32
    return %arg0, %c0_i32, %c0_i32_0 : i32, i32, i32
  }
}

</mosaic_0001>

<bundles_post_ra>
// kernel: tpu_custom_call.1
= control target key start
LH: loop header
LB: loop body
LE: loop exit
PB: predicated region body
PF: predicated region fallthrough
CT: control target
= control target key end

     0   :  { %7 = vsyncpa [#allocation3], 0  ;;  %s198_s0 = inlined_call_operand.hbm [shape: f32[1,2,2], index: 0, kind: input, shape index: {}]   ;;  %s199_s1 = inlined_call_operand.vmem [shape: f32[6], index: 1, kind: input, shape index: {}]   ;;  %s200_s2 = inlined_call_operand.hbm [shape: f32[1,2,2], index: 2, kind: output, shape index: {}]  }
   0x1   :  { %8 = vsyncpa [#allocation5], 0 }
   0x2   :  { %9 = vsyncpa [#allocation4], 0  ;;  %s26_s11 = sshll.u32 %s199_s1, 4  ;;  %s153_s12 = smov [#allocation2]   ;;  %s27_s11 = int_to_ptr.vmem [resolvable:$true] %s26_s11 }
   0x3   :  { %s16_s13 = sshll.u32 %s153_s12, 4  ;;  %s91_s16 = scalar_lea.hbm %s198_s0, 32  ;;  %s17_s13 = int_to_ptr.vmem [resolvable:$true] %s16_s13 }
   0x4   :  { %p92_p0 = scmp.ne.s32.totalorder %s198_s0, %s91_s16  ;;  %p95_p1 = scmp.lt.u32.totalorder %s91_s16, %s198_s0 }
   0x6   :  { %p97_p2 = pnand %p95_p1, %p92_p0 }
   0x8   :  { %100 = shalt.err (!%p97_p2)
}
   0x9   :  { %s101_s21 = scalar_lea.vmem %s17_s13, 32  ;;  %p106_p4 = scmp.lt.s32.totalorder %s17_s13, %s17_s13 }
   0xa   :  { %p102_p3 = scmp.ne.s32.totalorder %s17_s13, %s101_s21  ;;  %p107_p5 = scmp.lt.s32.totalorder %s101_s21, %s101_s21 }
   0xc   :  { %p108_p6 = por %p107_p5, %p106_p4 }
   0xe   :  { %p109_p7 = pnand %p108_p6, %p102_p3 }
  0x10   :  { %112 = shalt.err (!%p109_p7)
}
  0x11   :  { %19 = dma.hbm_to_vmem [thread:$0]  %s198_s0, 32, %s17_s13, [#allocation3]  }
  0x12   :  { %s113_s23 = scalar_lea.vmem %s27_s11, 16  ;;  %p118_p9 = scmp.lt.s32.totalorder %s27_s11, %s27_s11 }
  0x13   :  { %p114_p8 = scmp.ne.s32.totalorder %s27_s11, %s113_s23  ;;  %p119_p10 = scmp.lt.s32.totalorder %s113_s23, %s113_s23 }
  0x15   :  { %p120_p11 = por %p119_p10, %p118_p9 }
  0x17   :  { %p121_p12 = pnand %p120_p11, %p114_p8 }
  0x19   :  { %124 = shalt.err (!%p121_p12)
}
  0x1a   :  { %s154_s24 = smov [#allocation6]  }
  0x1b   :  { %29 = dma.vmem_to_smem %s27_s11, 16, %s154_s24, [#allocation5]  }
  0x1c   :  { %147 = dma.done.wait [#allocation3], 32  }
  0x1d   :  { %148 = vsyncadd [#allocation3], 4294967264 }
  0x1e   :  { %149 = dma.done.wait [#allocation5], 16  }
  0x1f   :  { %150 = vsyncadd [#allocation5], 4294967280 }
  0x20   :  { %36 = sfence }
  0x21   :  { %s83_s25 = sld [smem:[#allocation6 + $0x4]]  ;;  %s40_s26 = sld [smem:[#allocation6]]  ;;  %v37_v0 = vld [vmem:[#allocation2] sm:$0x3]  ;;  %vm51_vm0 = vcmask 8192  }
  0x22   :  { %s84_s27 = sld [smem:[#allocation6 + $0x1]]  ;;  %s85_s28 = sld [smem:[#allocation6 + $0x5]] }
  0x23   :  { %s86_s29 = sld [smem:[#allocation6 + $0x2]]  ;;  %s87_s0 = sld [smem:[#allocation6 + $0x3]] }
  0x24   :  { %s155_s30 = smov [#allocation7]  }
  0x25   :  { %s73_s3 = sshll.u32 %s155_s30, 4  ;;  %s74_s3 = int_to_ptr.vmem [resolvable:$true] %s73_s3 }
  0x26   :  { %s125_s4 = scalar_lea.vmem %s74_s3, 32  ;;  %p130_p0 = scmp.lt.s32.totalorder %s74_s3, %s74_s3 }
  0x27   :  { %v39_v1 = vstv %s83_s25  ;;  %v41_v2 = vstv %s40_s26  ;;  %p126_p13 = scmp.ne.s32.totalorder %s74_s3, %s125_s4  ;;  %p131_p1 = scmp.lt.s32.totalorder %s125_s4, %s125_s4 }
  0x28   :  { %v42_v3 = vmul.f32 %v41_v2, %v37_v0  ;;  %v45_v4 = vstv %s84_s27  ;;  %v54_v6 = vstv %s85_s28 }
  0x29   :  { %v46_v5 = vmul.f32 %v45_v4, %v37_v0  ;;  %v56_v7 = vstv %s86_s29  ;;  %v60_v8 = vstv %s87_s0  ;;  %p132_p2 = por %p131_p1, %p130_p0 }
  0x2a   :  { %v43_v9 = vadd.f32 %v42_v3, %v39_v1  ;;  %v57_v10 = vmul.f32 %v56_v7, %v37_v0  ;;  %v61_v11 = vmul.f32 %v60_v8, %v37_v0 }
  0x2b   :  { %v48_v12 = vrot.slane %v46_v5, 1  ;;  %p133_p3 = pnand %p132_p2, %p126_p13 }
  0x2c   :  { %v58_v13 = vadd.f32 %v57_v10, %v54_v6  ;;  %v63_v14 = vrot.slane %v61_v11, 1 }
  0x2d   :  { %v50_v15 = vadd.f32 %v48_v12, %v43_v9 }
  0x2e   :  { %v65_v16 = vadd.f32 %v63_v14, %v58_v13 }
  0x2f   :  { %52 = vst.msk [vmem:[#allocation7] sm:$0x1] %vm51_vm0, %v50_v15 }
  0x30   :  { %66 = vst.msk [vmem:[#allocation7 + $0x1] sm:$0x1] %vm51_vm0, %v65_v16 }
  0x31   :  { %136 = shalt.err (!%p133_p3)
}
  0x32   :  { %s137_s7 = scalar_lea.hbm %s200_s2, 32 }
  0x33   :  { %p138_p4 = scmp.ne.s32.totalorder %s200_s2, %s137_s7  ;;  %p141_p5 = scmp.lt.u32.totalorder %s137_s7, %s200_s2 }
  0x35   :  { %p143_p6 = pnand %p141_p5, %p138_p4 }
  0x37   :  { %146 = shalt.err (!%p143_p6)
}
  0x38   :  { %76 = dma.vmem_to_hbm [thread:$0]  %s74_s3, 32, %s200_s2, [#allocation4]  }
  0x39   :  { %151 = dma.done.wait [#allocation4], 32  }
  0x3a   :  { %152 = vsyncadd [#allocation4], 4294967264 }
  0x3b   :  { %80 = vsyncpa [#allocation3], 1 }
  0x3c   :  { %81 = vsyncpa [#allocation4], 1 }
  0x3d   :  { %82 = vsyncpa [#allocation5], 1 }

</bundles_post_ra>
